<compile_context>
chip_gen: v5e
topology: v5e:2x2
jax: 0.10.0
libtpu: 0.0.40
codegen_flags: <defaults>
</compile_context>

<pallas_src>
import jax
import jax.numpy as jnp
from jax.experimental import pallas as pl
from jax.experimental.pallas import tpu as pltpu


# ----------------------------- Pallas kernel --------------------------------
def _mlp_kernel(x_ref, wgu_ref, wd_ref, o_ref, acc_ref):
    # x_ref:   (tm, H)       token tile (f32 in, cast to bf16 for the MXU)
    # wgu_ref: (H, 2*tI)     fused [gate | up] weight tile (bf16)
    # wd_ref:  (tI, H)       down_proj weight tile (bf16)
    # o_ref:   (tm, H)       output tile (f32)
    # acc_ref: (tm, H) f32   down-proj accumulator (persists across j)
    j = pl.program_id(1)

    @pl.when(j == 0)
    def _():
        acc_ref[...] = jnp.zeros_like(acc_ref)

    x = x_ref[...].astype(wgu_ref.dtype)                       # (tm, H) bf16
    gu = jnp.dot(x, wgu_ref[...],
                 preferred_element_type=jnp.float32)           # (tm, 2*tI) f32
    tI = wd_ref.shape[0]
    g = gu[:, :tI]
    u = gu[:, tI:]
    h = (g * jax.nn.sigmoid(g)) * u                            # SiLU(gate) * up, f32
    acc_ref[...] += jnp.dot(h.astype(wd_ref.dtype), wd_ref[...],
                            preferred_element_type=jnp.float32)

    @pl.when(j == pl.num_programs(1) - 1)
    def _():
        o_ref[...] = acc_ref[...].astype(o_ref.dtype)


# ----------------------------- wrapper ---------------------------------------
def _vmem_limit_bytes():
    # Per-generation scoped-VMEM budget: ~75% of physical (96 MiB on v5e/v6e,
    # 48 MiB on v7x).  Fallback is safe on every generation.
    try:
        return int(pltpu.get_tpu_info().vmem_capacity_bytes * 3 // 4)
    except Exception:
        return 48 * 1024 * 1024


def _pack_gate_up(wg_t, wu_t, tI):
    """wg_t, wu_t: (H, I) bf16 -> (I//tI, H, 2*tI) fused per-tile [gate|up]."""
    H, I = wg_t.shape
    nI = I // tI
    wg_r = wg_t.reshape(H, nI, tI).transpose(1, 0, 2)          # (nI, H, tI)
    wu_r = wu_t.reshape(H, nI, tI).transpose(1, 0, 2)          # (nI, H, tI)
    return jnp.concatenate([wg_r, wu_r], axis=-1)              # (nI, H, 2*tI)


def quant_deepseek_mlp_pallas(x_tokens, wg_t, wu_t, wd_t, *, tm=256, tI=512):
    """x_tokens: (T, H) f32; wg_t/wu_t: (H, I) bf16; wd_t: (I, H) bf16 -> (T, H) f32."""
    T, H = x_tokens.shape
    I = wg_t.shape[1]
    tm = min(tm, T)
    tI = min(tI, I)
    assert T % tm == 0 and I % tI == 0
    assert tI == I or tI % 128 == 0, "I tile must be lane-aligned"

    wgu = _pack_gate_up(wg_t, wu_t, tI)                        # (I//tI, H, 2*tI)

    return pl.pallas_call(
        _mlp_kernel,
        out_shape=jax.ShapeDtypeStruct((T, H), x_tokens.dtype),
        grid_spec=pltpu.PrefetchScalarGridSpec(
            num_scalar_prefetch=0,
            grid=(T // tm, I // tI),
            in_specs=[
                pl.BlockSpec((tm, H), lambda i, j: (i, 0)),          # x tile
                pl.BlockSpec((None, H, 2 * tI), lambda i, j: (j, 0, 0)),  # fused gate|up
                pl.BlockSpec((tI, H), lambda i, j: (j, 0)),          # down tile
            ],
            out_specs=pl.BlockSpec((tm, H), lambda i, j: (i, 0)),
            scratch_shapes=[pltpu.VMEM((tm, H), jnp.float32)],       # f32 accumulator
        ),
        compiler_params=pltpu.CompilerParams(
            dimension_semantics=("parallel", "arbitrary"),
            vmem_limit_bytes=_vmem_limit_bytes(),
        ),
    )(x_tokens, wgu, wd_t)


# ----------------------------- glue / params --------------------------------
def fake_quant_4bit(w):
    """Symmetric per-output-channel 4-bit quant/dequant.  w: (out, in) f32."""
    absmax = jnp.max(jnp.abs(w), axis=1, keepdims=True)
    scale = jnp.where(absmax > 0, absmax / 7.0, 1.0)
    q = jnp.clip(jnp.round(w / scale), -8, 7)
    return q * scale


def make_params(key, hidden_size, intermediate_size):
    kg, ku, kd = jax.random.split(key, 3)
    std = 0.02
    # PyTorch Linear weight layout is (out_features, in_features).
    wg = jax.random.normal(kg, (intermediate_size, hidden_size), jnp.float32) * std
    wu = jax.random.normal(ku, (intermediate_size, hidden_size), jnp.float32) * std
    wd = jax.random.normal(kd, (hidden_size, intermediate_size), jnp.float32) * std
    # Emulate Linear4bit: quantize -> dequantize, transpose to (in, out), bf16.
    wg_t = fake_quant_4bit(wg).T.astype(jnp.bfloat16)   # (H, I)
    wu_t = fake_quant_4bit(wu).T.astype(jnp.bfloat16)   # (H, I)
    wd_t = fake_quant_4bit(wd).T.astype(jnp.bfloat16)   # (I, H)
    return wg_t, wu_t, wd_t


def reference_mlp(x_tokens, wg_t, wu_t, wd_t):
    xb = x_tokens.astype(wg_t.dtype)
    g = jnp.dot(xb, wg_t, preferred_element_type=jnp.float32)
    u = jnp.dot(xb, wu_t, preferred_element_type=jnp.float32)
    h = (g * jax.nn.sigmoid(g)) * u
    return jnp.dot(h.astype(wd_t.dtype), wd_t,
                   preferred_element_type=jnp.float32).astype(x_tokens.dtype)


if __name__ == "__main__":
    B, S = 2, 8
    hidden_size = 128
    intermediate_size = 256

    key = jax.random.PRNGKey(0)
    kx, kw = jax.random.split(key)
    x = jax.random.normal(kx, (B, S, hidden_size), jnp.float32)
    wg_t, wu_t, wd_t = make_params(kw, hidden_size, intermediate_size)

    x_tokens = x.reshape(B * S, hidden_size)                     # (T, H)
    # Small shapes: clamp token tile to T=16; tI=128 exercises the 2-step
    # intermediate-axis accumulation path.
    out_tokens = quant_deepseek_mlp_pallas(x_tokens, wg_t, wu_t, wd_t,
                                           tm=256, tI=128)
    out = out_tokens.reshape(B, S, hidden_size)
    jax.block_until_ready(out)

    ref = reference_mlp(x_tokens, wg_t, wu_t, wd_t).reshape(B, S, hidden_size)
    assert jnp.allclose(out, ref, atol=1e-3, rtol=1e-3), "mismatch vs reference"

    print("KERNEL_OK")
</pallas_src>

<mosaic_0001>
module attributes {stable_mosaic.version = 11 : i64} {
  func.func @_mlp_kernel(%arg0: i32, %arg1: i32, %arg2: memref<16x128xf32, #tpu.memory_space<vmem>>, %arg3: memref<1x128x256xbf16, #tpu.memory_space<vmem>>, %arg4: memref<128x128xbf16, #tpu.memory_space<vmem>>, %arg5: memref<16x128xf32, #tpu.memory_space<vmem>>, %arg6: memref<16x128xf32, #tpu.memory_space<vmem>>) attributes {dimension_semantics = [#tpu.dimension_semantics<parallel>, #tpu.dimension_semantics<arbitrary>], iteration_bounds = array<i64: 1, 2>, scalar_prefetch = 0 : i64, scratch_operands = 1 : i64, tpu.core_type = #tpu.core_type<tc>, window_params = [{transform_indices = @transform_0, window_bounds = array<i64: 16, 128>}, {transform_indices = @transform_1, window_bounds = array<i64: 1, 128, 256>}, {transform_indices = @transform_2, window_bounds = array<i64: 128, 128>}, {transform_indices = @transform_3, window_bounds = array<i64: 16, 128>}]} {
    %c0_i32 = arith.constant 0 : i32
    %0 = arith.cmpi eq, %arg1, %c0_i32 : i32
    %1 = arith.extui %0 : i1 to i32
    %c0_i32_0 = arith.constant 0 : i32
    %2 = arith.cmpi ne, %1, %c0_i32_0 : i32
    scf.if %2 {
      %cst_14 = arith.constant 0.000000e+00 : f32
      %26 = vector.broadcast %cst_14 : f32 to vector<16x128xf32>
      %c0_15 = arith.constant 0 : index
      %c0_16 = arith.constant 0 : index
      %27 = vector.load %arg6[%c0_15, %c0_16] : memref<16x128xf32, #tpu.memory_space<vmem>>, vector<16x128xf32>
      tpu.vector_store %arg6[%c0_15, %c0_16], %26 {strides = array<i32>} : memref<16x128xf32, #tpu.memory_space<vmem>>, vector<16x128xf32>,
    } else {
    }
    %c0 = arith.constant 0 : index
    %c0_1 = arith.constant 0 : index
    %3 = vector.load %arg2[%c0, %c0_1] : memref<16x128xf32, #tpu.memory_space<vmem>>, vector<16x128xf32>
    %4 = arith.truncf %3 : vector<16x128xf32> to vector<16x128xbf16>
    %c0_2 = arith.constant 0 : index
    %c0_3 = arith.constant 0 : index
    %c0_4 = arith.constant 0 : index
    %5 = vector.load %arg3[%c0_2, %c0_3, %c0_4] : memref<1x128x256xbf16, #tpu.memory_space<vmem>>, vector<1x128x256xbf16>
    %6 = vector.shape_cast %5 : vector<1x128x256xbf16> to vector<128x256xbf16>
    %cst = arith.constant dense<0.000000e+00> : vector<16x256xf32>
    %7 = tpu.matmul %4, %6, %cst {dimension_numbers = #tpu.dot_dimension_numbers<[1], [0], [0], [1], [0, 0, 1, 1], [], []>} : vector<16x128xbf16>, vector<128x256xbf16>, vector<16x256xf32> -> vector<16x256xf32>
    %8 = vector.extract_strided_slice %7 {offsets = [0, 0], sizes = [16, 128], strides = [1, 1]} : vector<16x256xf32> to vector<16x128xf32>
    %9 = vector.extract_strided_slice %7 {offsets = [0, 128], sizes = [16, 128], strides = [1, 1]} : vector<16x256xf32> to vector<16x128xf32>
    %10 = arith.negf %8 : vector<16x128xf32>
    %11 = math.exp %10 : vector<16x128xf32>
    %cst_5 = arith.constant 1.000000e+00 : f32
    %12 = vector.broadcast %cst_5 : f32 to vector<16x128xf32>
    %13 = arith.addf %12, %11 : vector<16x128xf32>
    %14 = arith.divf %12, %13 : vector<16x128xf32>
    %15 = arith.mulf %8, %14 : vector<16x128xf32>
    %16 = arith.mulf %15, %9 : vector<16x128xf32>
    %c0_6 = arith.constant 0 : index
    %c0_7 = arith.constant 0 : index
    %17 = vector.load %arg6[%c0_6, %c0_7] : memref<16x128xf32, #tpu.memory_space<vmem>>, vector<16x128xf32>
    %18 = arith.truncf %16 : vector<16x128xf32> to vector<16x128xbf16>
    %c0_8 = arith.constant 0 : index
    %c0_9 = arith.constant 0 : index
    %19 = vector.load %arg4[%c0_8, %c0_9] : memref<128x128xbf16, #tpu.memory_space<vmem>>, vector<128x128xbf16>
    %cst_10 = arith.constant dense<0.000000e+00> : vector<16x128xf32>
    %20 = tpu.matmul %18, %19, %cst_10 {dimension_numbers = #tpu.dot_dimension_numbers<[1], [0], [0], [1], [0, 0, 1, 1], [], []>} : vector<16x128xbf16>, vector<128x128xbf16>, vector<16x128xf32> -> vector<16x128xf32>
    %21 = arith.addf %17, %20 : vector<16x128xf32>
    %c0_11 = arith.constant 0 : index
    %c0_12 = arith.constant 0 : index
    %22 = vector.load %arg6[%c0_11, %c0_12] : memref<16x128xf32, #tpu.memory_space<vmem>>, vector<16x128xf32>
    tpu.vector_store %arg6[%c0_11, %c0_12], %21 {strides = array<i32>} : memref<16x128xf32, #tpu.memory_space<vmem>>, vector<16x128xf32>,
    %c1_i32 = arith.constant 1 : i32
    %23 = arith.cmpi eq, %arg1, %c1_i32 : i32
    %24 = arith.extui %23 : i1 to i32
    %c0_i32_13 = arith.constant 0 : i32
    %25 = arith.cmpi ne, %24, %c0_i32_13 : i32
    scf.if %25 {
      %c0_14 = arith.constant 0 : index
      %c0_15 = arith.constant 0 : index
      %26 = vector.load %arg6[%c0_14, %c0_15] : memref<16x128xf32, #tpu.memory_space<vmem>>, vector<16x128xf32>
      %c0_16 = arith.constant 0 : index
      %c0_17 = arith.constant 0 : index
      %27 = vector.load %arg5[%c0_16, %c0_17] : memref<16x128xf32, #tpu.memory_space<vmem>>, vector<16x128xf32>
      tpu.vector_store %arg5[%c0_16, %c0_17], %26 {strides = array<i32>} : memref<16x128xf32, #tpu.memory_space<vmem>>, vector<16x128xf32>,
    } else {
    }
    return
  }
  func.func @transform_0(%arg0: i32, %arg1: i32) -> (i32, i32) {
    %c0_i32 = arith.constant 0 : i32
    %c0_i32_0 = arith.constant 0 : i32
    return %arg0, %c0_i32 : i32, i32
  }
  func.func @transform_1(%arg0: i32, %arg1: i32) -> (i32, i32, i32) {
    %c0_i32 = arith.constant 0 : i32
    %c0_i32_0 = arith.constant 0 : i32
    %c0_i32_1 = arith.constant 0 : i32
    return %arg1, %c0_i32, %c0_i32_0 : i32, i32, i32
  }
  func.func @transform_2(%arg0: i32, %arg1: i32) -> (i32, i32) {
    %c0_i32 = arith.constant 0 : i32
    %c0_i32_0 = arith.constant 0 : i32
    return %arg1, %c0_i32 : i32, i32
  }
  func.func @transform_3(%arg0: i32, %arg1: i32) -> (i32, i32) {
    %c0_i32 = arith.constant 0 : i32
    %c0_i32_0 = arith.constant 0 : i32
    return %arg0, %c0_i32 : i32, i32
  }
}

</mosaic_0001>

<bundles_post_ra>
// kernel: tpu_custom_call.1
= control target key start
LH: loop header
LB: loop body
LE: loop exit
PB: predicated region body
PF: predicated region fallthrough
CT: control target
= control target key end

     0   :  { %8 = vsyncpa [#allocation4], 0  ;;  %s1260_s0 = inlined_call_operand.hbm [shape: f32[16,128], index: 0, kind: input, shape index: {}]   ;;  %s1261_s1 = inlined_call_operand.hbm [shape: bf16[2,128,256], index: 1, kind: input, shape index: {}]   ;;  %s1262_s2 = inlined_call_operand.hbm [shape: bf16[256,128], index: 2, kind: input, shape index: {}]   ;;  %s1263_s3 = inlined_call_operand.hbm [shape: f32[16,128], index: 3, kind: output, shape index: {}]  }
   0x1   :  { %9 = vsyncpa [#allocation7], 0 }
   0x2   :  { %11 = vsyncpa [#allocation7 + $0x1], 0 }
   0x3   :  { %12 = vsyncpa [#allocation5], 0  ;;  %s1084_s12 = smov 0   ;;  %s1086_s13 = smov 0  }
   0x4   :  { %s1088_s14 = smov 0   ;;  %s1090_s15 = smov 0  }
   0x5   :  { %s1092_s16 = smov 0   ;;  %s1094_s17 = smov 0  }
   0x6 LB: > { %s27_s18 = sadd.s32 1, %s1049_s16  ;;  %s63_s19 = sadd.s32 1, %s1041_s14  ;;  %s1053_s17 = sphi %s1094_s17, %s18_s17   ;;  %s1049_s16 = sphi %s1092_s16, %s1272_s16   ;;  %s1045_s15 = sphi %s1090_s15, %s1271_s15   ;;  %s1041_s14 = sphi %s1088_s14, %s1270_s14   ;;  %s1037_s13 = sphi %s1086_s13, %s1269_s13   ;;  %s1033_s12 = sphi %s1084_s12, %s1268_s12  }
   0x7   : > { %p28_p0 = scmp.ge.s32.totalorder %s27_s18, 2  ;;  %p70_p1 = scmp.ne.s32.totalorder %s1041_s14, %s1037_s13 }
   0x8   : > { %p71_p2 = scmp.eq.s32.totalorder %s1053_s17, 0  ;;  %p808_p5 = scmp.lt.s32.totalorder %s1053_s17, 2 }
   0x9   : > { %s1274_s18 = smov (%p28_p0, %s27_s18), 0  ;;  %s169_s22 = sand.u32 1, %s1053_s17  }
   0xa   : > { %p1121_p3 = por %p71_p2, %p70_p1  ;;  %s60_s21 = ssub.s32 %s1049_s16, %s1274_s18 }
   0xb   : > { %p61_p4 = scmp.eq.s32.totalorder %s60_s21, 0  ;;  %s171_s23 = sand.u32 1, %s1041_s14  }
   0xc   : > { %s644_s25 = sshll.u32 %s171_s23, 7  ;;  %s758_s26 = sshll.u32 %s1049_s16, 7 }
   0xd   : > { %s1131_s24 = scalar_select %p61_p4, %s1041_s14, %s63_s19  }
   0xe   : > { %s178_s29 = scalar_lea.hbm %s1261_s1, %s758_s26  ;;  %s173_s30 = scalar_lea.vmem [#allocation6], %s644_s25 }
   0xf   : > { %s181_s4 = sshll.u32 %s173_s30, 4  ;;  %s179_s5 = sshll.u32 %s178_s29, 4  ;;  %s182_s4 = int_to_ptr.vmem [resolvable:$true] %s181_s4  ;;  %s180_s5 = int_to_ptr.hbm [resolvable:$true] %s179_s5 }
  0x10   : > { %p1139_p6 = pnand %p808_p5, %p1121_p3  ;;  %s647_s7 = sshll.u32 %s171_s23, 6 }
  0x11   : > { %s1143_s8 = scalar_lea.sflag [#allocation7], %s169_s22  ;;  %s1055_s9 = smov 128  }
  0x12   : > { %s1056_s10 = smov 8   ;;  %s195_s11 = scalar_lea.vmem [#allocation8], %s647_s7 }
  0x13   : > { %803 = dma.hbm_to_vmem [thread:$0]  (!%p1139_p6), %s180_s5, 2048, %s182_s4, %s1143_s8, %s1055_s9, %s1055_s9, %s1056_s10  }
  0x14   : > { %s203_s19 = sshll.u32 %s195_s11, 4  ;;  %s1149_s21 = sadd.s32 4294967295, %s1053_s17   ;;  %s204_s19 = int_to_ptr.vmem [resolvable:$true] %s203_s19 }
  0x15   : > { %p76_p7 = scmp.ne.s32.totalorder %s1037_s13, %s1033_s12  ;;  %p77_p8 = scmp.eq.s32.totalorder %s1149_s21, 0 }
  0x16   : > { %p641_p9 = scmp.ge.s32.totalorder %s1053_s17, 1  ;;  %p139_p10 = scmp.lt.s32.totalorder %s1053_s17, 3 }
  0x17   : > { %p1158_p11 = por %p77_p8, %p76_p7  ;;  %s153_s25 = sshll.u32 %s1260_s0, 4  ;;  %s154_s25 = int_to_ptr.hbm [resolvable:$true] %s153_s25 }
  0x18   : > { %p1165_p12 = pnand %p641_p9, %p139_p10  ;;  %s759_s12 = sshll.u32 %s1049_s16, 6 }
  0x19   : > { %s1057_s27 = smov [#allocation3]   ;;  %s200_s4 = scalar_lea.hbm %s1262_s2, %s759_s12 }
  0x1a   : > { %p796_p13 = pneg %p1165_p12  ;;  %s155_s28 = sshll.u32 %s1057_s27, 4  ;;  %s156_s28 = int_to_ptr.vmem [resolvable:$true] %s155_s28 }
  0x1b   : > { %s201_s5 = sshll.u32 %s200_s4, 4  ;;  %s1058_s7 = smov 64   ;;  %s202_s5 = int_to_ptr.hbm [resolvable:$true] %s201_s5 }
  0x1c   : > { %p797_p0 = pnand %p796_p13, %p77_p8  ;;  %s1059_s11 = smov 4  }
  0x1d   : > { %806 = dma.hbm_to_vmem [thread:$0]  (!%p1139_p6), %s202_s5, 1024, %s204_s19, %s1143_s8, %s1058_s7, %s1058_s7, %s1059_s11  }
  0x1e   : > { %799 = dma.hbm_to_vmem [thread:$0]  (!%p797_p0), %s154_s25, 256, %s156_s28, [#allocation4], %s1055_s9, %s1055_s9, %s1056_s10  }
  0x1f   : > { %215 = sbr.rel (%p1165_p12) target bundleno = 410 (0x19a), region = 32 }
  0x24   : > { %1020 = dma.done.wait (%p77_p8), [#allocation4], 256  }
  0x25   : > { %1022 = vsyncadd (%p77_p8), [#allocation4], 4294967040  ;;  %s222_s22 = sand.u32 1, %s1149_s21   ;;  %s224_s23 = sand.u32 1, %s1037_s13  }
  0x26   : > { %s652_s12 = sshll.u32 %s224_s23, 7  ;;  %s223_s9 = scalar_lea.sflag [#allocation7], %s222_s22 }
  0x27   : > { %s1188_s10 = scalar_lea.vmem [#allocation6], %s652_s12 }
  0x28   : > { %1024 = dma.done.wait (%p1158_p11), %s223_s9, 3072  }
  0x29   : > { %1026 = vsyncadd (%p1158_p11), %s223_s9, 4294964224  ;;  %s653_s6 = sshll.u32 %s224_s23, 6  ;;  %p654_p1 = scmp.ne.s32.totalorder %s1045_s15, 0 }
  0x2a   : > { %s1194_s8 = scalar_lea.vmem [#allocation8], %s653_s6 }
  0x2b   : > { %266 = sbr.rel (%p654_p1) target bundleno = 51 (0x33), region = 48 }
  0x30   : > { %v1060_v0 = vmov 0.0  }
  0x31   : > { %267 = vst [vmem:[#allocation2] sm:$0xff] %v1060_v0 }
  0x32   : > { %268 = vst [vmem:[#allocation2 + $0x8] sm:$0xff] %v1060_v0 }
  0x33 PF: > { %v713_v1 = vld [vmem:[%s1188_s10 + $0x70] sm:$0xf]  ;;  %v775_v2 = vld [vmem:[%s1188_s10 + $0x74] sm:$0xf0]  ;;  %v705_v3 = vld [vmem:[%s1188_s10 + $0x60] sm:$0xf] }
  0x34   : > { %v714_v4 = vor.u32 %v775_v2, %v713_v1  ;;  %v773_v5 = vld [vmem:[%s1188_s10 + $0x64] sm:$0xf0]  ;;  %v697_v7 = vld [vmem:[%s1188_s10 + $0x50] sm:$0xf]  ;;  %v771_v8 = vld [vmem:[%s1188_s10 + $0x54] sm:$0xf0] }
  0x35   : > { %v706_v6 = vor.u32 %v773_v5, %v705_v3  ;;  %v774_v9 = vld [vmem:[%s1188_s10 + $0x74] sm:$0xf]  ;;  %v715_v10 = vld [vmem:[%s1188_s10 + $0x78] sm:$0xf0]  ;;  %v772_v12 = vld [vmem:[%s1188_s10 + $0x64] sm:$0xf]  ;;  %v698_v14 = vor.u32 %v771_v8, %v697_v7 }
  0x36   : > { %368 = vmatpush.bf16.msra.mxu0 %v714_v4  ;;  %v718_v11 = vor.u32 %v774_v9, %v715_v10  ;;  %v707_v13 = vld [vmem:[%s1188_s10 + $0x68] sm:$0xf0]  ;;  %v689_v15 = vld [vmem:[%s1188_s10 + $0x40] sm:$0xf]  ;;  %v769_v17 = vld [vmem:[%s1188_s10 + $0x44] sm:$0xf0] }
  0x37   : > { %v710_v16 = vor.u32 %v772_v12, %v707_v13  ;;  %v770_v18 = vld [vmem:[%s1188_s10 + $0x54] sm:$0xf]  ;;  %v699_v19 = vld [vmem:[%s1188_s10 + $0x58] sm:$0xf0]  ;;  %v690_v20 = vor.u32 %v769_v17, %v689_v15  ;;  %v681_v21 = vld [vmem:[%s1188_s10 + $0x30] sm:$0xf] }
  0x38   : > { %382 = vmatpush.bf16.msra.mxu1 %v718_v11  ;;  %v702_v22 = vor.u32 %v770_v18, %v699_v19  ;;  %v767_v23 = vld [vmem:[%s1188_s10 + $0x34] sm:$0xf0]  ;;  %v768_v24 = vld [vmem:[%s1188_s10 + $0x44] sm:$0xf]  ;;  %v691_v25 = vld [vmem:[%s1188_s10 + $0x48] sm:$0xf0] }
  0x39   : > { %v682_v26 = vor.u32 %v767_v23, %v681_v21  ;;  %v673_v27 = vld [vmem:[%s1188_s10 + $0x20] sm:$0xf]  ;;  %v694_v28 = vor.u32 %v768_v24, %v691_v25  ;;  %v765_v29 = vld [vmem:[%s1188_s10 + $0x24] sm:$0xf0]  ;;  %v766_v30 = vld [vmem:[%s1188_s10 + $0x34] sm:$0xf] }
  0x3a   : > { %369 = vmatpush.bf16.msra.mxu0 %v706_v6  ;;  %v683_v31 = vld [vmem:[%s1188_s10 + $0x38] sm:$0xf0]  ;;  %v674_v32 = vor.u32 %v765_v29, %v673_v27  ;;  %v665_v33 = vld [vmem:[%s1188_s10 + $0x10] sm:$0xf]  ;;  %v763_v35 = vld [vmem:[%s1188_s10 + $0x14] sm:$0xf0] }
  0x3b   : > { %v686_v34 = vor.u32 %v766_v30, %v683_v31  ;;  %v764_v36 = vld [vmem:[%s1188_s10 + $0x24] sm:$0xf]  ;;  %v675_v37 = vld [vmem:[%s1188_s10 + $0x28] sm:$0xf0]  ;;  %v666_v38 = vor.u32 %v763_v35, %v665_v33  ;;  %v657_v39 = vld [vmem:[%s1188_s10] sm:$0xf] }
  0x3c   : > { %383 = vmatpush.bf16.msra.mxu1 %v710_v16  ;;  %v678_v40 = vor.u32 %v764_v36, %v675_v37  ;;  %v761_v41 = vld [vmem:[%s1188_s10 + $0x4] sm:$0xf0]  ;;  %v762_v42 = vld [vmem:[%s1188_s10 + $0x14] sm:$0xf]  ;;  %v667_v43 = vld [vmem:[%s1188_s10 + $0x18] sm:$0xf0] }
  0x3d   : > { %v658_v44 = vor.u32 %v761_v41, %v657_v39  ;;  %v269_v45 = vld [vmem:[#allocation3] sm:$0xff]  ;;  %v270_v46 = vld [vmem:[#allocation3 + $0x8] sm:$0xff]  ;;  %v670_v47 = vor.u32 %v762_v42, %v667_v43  ;;  %v760_v48 = vld [vmem:[%s1188_s10 + $0x4] sm:$0xf]  ;;  %p753_p2 = scmp.ne.s32.totalorder %s1045_s15, 1 }
  0x3e   : > { %370 = vmatpush.bf16.msra.mxu0 %v698_v14  ;;  %v659_v49 = vld [vmem:[%s1188_s10 + $0x8] sm:$0xf0]  ;;  %v271_v50 = vpack.c.bf16 %v270_v46, %v269_v45  ;;  %v783_v52 = vld [vmem:[%s1194_s8 + $0x38] sm:$0xff]  ;;  %v782_v53 = vld [vmem:[%s1194_s8 + $0x30] sm:$0xff] }
  0x3f   : > { %v662_v51 = vor.u32 %v760_v48, %v659_v49  ;;  %505 = vmatpush.bf16.msra.mxu2 %v783_v52  ;;  %v781_v54 = vld [vmem:[%s1194_s8 + $0x28] sm:$0xff]  ;;  %v780_v55 = vld [vmem:[%s1194_s8 + $0x20] sm:$0xff]  ;;  %v779_v56 = vld [vmem:[%s1194_s8 + $0x18] sm:$0xff] }
  0x40   : > { %384 = vmatpush.bf16.msra.mxu1 %v702_v22  ;;  %v778_v57 = vld [vmem:[%s1194_s8 + $0x10] sm:$0xff]  ;;  %v777_v60 = vld [vmem:[%s1194_s8 + $0x8] sm:$0xff]  ;;  %v776_v61 = vld [vmem:[%s1194_s8] sm:$0xff] }
  0x41   : > { %v438_v31 = vld [vmem:[#allocation2] sm:$0xff] }
  0x42   : > { %371 = vmatpush.bf16.msra.mxu0 %v690_v20 }
  0x43   : > { %506 = vmatpush.bf16.msra.mxu2 %v782_v53 }
  0x44   : > { %385 = vmatpush.bf16.msra.mxu1 %v694_v28 }
  0x46   : > { %372 = vmatpush.bf16.msra.mxu0 %v682_v26 }
  0x47   : > { %507 = vmatpush.bf16.msra.mxu2 %v781_v54 }
  0x48   : > { %386 = vmatpush.bf16.msra.mxu1 %v686_v34  ;;  %v439_v34 = vld [vmem:[#allocation2 + $0x8] sm:$0xff] }
  0x4a   : > { %373 = vmatpush.bf16.msra.mxu0 %v674_v32 }
  0x4b   : > { %508 = vmatpush.bf16.msra.mxu2 %v780_v55 }
  0x4c   : > { %387 = vmatpush.bf16.msra.mxu1 %v678_v40 }
  0x4e   : > { %374 = vmatpush.bf16.msra.mxu0 %v666_v38 }
  0x4f   : > { %509 = vmatpush.bf16.msra.mxu2 %v779_v56 }
  0x50   : > { %388 = vmatpush.bf16.msra.mxu1 %v670_v47 }
  0x52   : > { %375 = vmatpush.bf16.msra.mxu0 %v658_v44 }
  0x53   : > { %510 = vmatpush.bf16.msra.mxu2 %v778_v57 }
  0x54   : > { %389 = vmatpush.bf16.msra.mxu1 %v662_v51 }
  0x55   : > { %376 = vmatmul.bf16.vlgmr.msra.gmra.mxu0 %v271_v50 }
  0x57   : > { %390 = vmatmul.bf16.vlgmr.msra.gmra.mxu1 %v271_v50  ;;  %511 = vmatpush.bf16.msra.mxu2 %v777_v60 }
  0x5b   : > { %512 = vmatpush.bf16.msra.mxu2 %v776_v61 }
  0xd2   : > { %v377_v58 = vpop.f32.mrf.mxu0 }
  0xd3   : > { %v719_v59 = vmul.f32 -1.442695, %v377_v58 }
  0xd4   : > { %v391_v13 = vpop.f32.mrf.mxu1 }
  0xd5   : > { %869 = vpow2.f32 %v719_v59 }
  0xda   : > { %v379_v62 = vpop.f32.mrf.mxu0 }
  0xdb   : > { %v870_v63 = vpop.eup %869  ;;  %v720_v0 = vmul.f32 -1.442695, %v379_v62 }
  0xdc   : > { %v402_v1 = vadd.f32 1.0, %v870_v63  ;;  %v393_v27 = vpop.f32.mrf.mxu1 }
  0xdd   : > { %871 = vpow2.f32 %v720_v0 }
  0xde   : > { %873 = vrcp.f32 %v402_v1  ;;  %v415_v10 = vand.u32 2147483648, %v402_v1  ;;  %vm409_vm1 = vweird.f32 %v402_v1  ;;  %v413_v11 = vand.u32 2147483647, %v402_v1 }
  0xe0   : > { %v416_v16 = vor.u32 1.1754944e-38, %v415_v10  ;;  %vm414_vm3 = vcmp.eq.f32.partialorder %v413_v11, 8.507059e+37 }
  0xe3   : > { %v872_v2 = vpop.eup %871 }
  0xe4   : > { %v874_v3 = vpop.eup %873  ;;  %v403_v4 = vadd.f32 1.0, %v872_v2 }
  0xe5   : > { %v405_v5 = vmul.f32 %v874_v3, %v402_v1  ;;  %vm410_vm0 = vweird.f32 %v874_v3 }
  0xe6   : > { %875 = vrcp.f32 %v403_v4  ;;  %vm411_vm2 = vmor %vm409_vm1, %vm410_vm0  ;;  %v430_v17 = vand.u32 2147483648, %v403_v4  ;;  %v428_v19 = vand.u32 2147483647, %v403_v4  ;;  %vm424_vm5 = vweird.f32 %v403_v4 }
  0xe7   : > { %v406_v6 = vsub.f32 1.0, %v405_v5 }
  0xe8   : > { %v431_v22 = vor.u32 1.1754944e-38, %v430_v17  ;;  %vm429_vm7 = vcmp.eq.f32.partialorder %v428_v19, 8.507059e+37 }
  0xe9   : > { %v407_v7 = vmul.f32 %v874_v3, %v406_v6 }
  0xeb   : > { %v408_v8 = vadd.f32 %v874_v3, %v407_v7 }
  0xec   : > { %v876_v9 = vpop.eup %875 }
  0xed   : > { %v420_v12 = vmul.f32 %v876_v9, %v403_v4  ;;  %v412_v14 = vsel %vm411_vm2, %v874_v3, %v408_v8  ;;  %vm425_vm4 = vweird.f32 %v876_v9 }
  0xee   : > { %v417_v20 = vsel %vm414_vm3, %v416_v16, %v412_v14  ;;  %vm426_vm6 = vmor %vm424_vm5, %vm425_vm4 }
  0xef   : > { %v421_v15 = vsub.f32 1.0, %v420_v12  ;;  %v434_v23 = vmul.f32 %v417_v20, %v377_v58 }
  0xf1   : > { %v422_v18 = vmul.f32 %v876_v9, %v421_v15  ;;  %v436_v28 = vmul.f32 %v434_v23, %v391_v13 }
  0xf3   : > { %v423_v21 = vadd.f32 %v876_v9, %v422_v18 }
  0xf5   : > { %v427_v24 = vsel %vm426_vm6, %v876_v9, %v423_v21 }
  0xf6   : > { %v432_v25 = vsel %vm429_vm7, %v431_v22, %v427_v24 }
  0xf7   : > { %v435_v26 = vmul.f32 %v432_v25, %v379_v62 }
  0xf9   : > { %v437_v29 = vmul.f32 %v435_v26, %v393_v27 }
  0xfb   : > { %v440_v30 = vpack.c.bf16 %v437_v29, %v436_v28 }
  0xfd   : > { %513 = vmatmul.bf16.vlgmr.msra.gmra.mxu2 %v440_v30 }
 0x180   : > { %v514_v32 = vpop.f32.mrf.mxu2 }
 0x181   : > { %v519_v33 = vadd.f32 %v514_v32, %v438_v31 }
 0x183   : > { %521 = vst [vmem:[#allocation2] sm:$0xff] %v519_v33 }
 0x187   : > { %526 = sbr.rel (%p753_p2) target bundleno = 404 (0x194), region = 52 }
 0x188   : > { %v516_v35 = vpop.f32.mrf.mxu2 }
 0x189   : > { %v520_v36 = vadd.f32 %v516_v35, %v439_v34 }
 0x18b   : > { %522 = vst [vmem:[#allocation2 + $0x8] sm:$0xff] %v520_v36 }
 0x18c   : > { %v527_v37 = vld [vmem:[#allocation2] sm:$0xff] }
 0x18d   : > { %529 = vst [vmem:[#allocation9] sm:$0xff] %v527_v37 }
 0x192   : > { %v528_v38 = vld [vmem:[#allocation2 + $0x8] sm:$0xff] }
 0x193   : > { %530 = vst [vmem:[#allocation9 + $0x8] sm:$0xff] %v528_v38 }
 0x194 PF: > { %p810_p3 = scmp.eq.s32.totalorder %s1149_s21, 1  ;;  %s541_s25 = sshll.u32 %s1263_s3, 4  ;;  %s542_s25 = int_to_ptr.hbm [resolvable:$true] %s541_s25 }
 0x195   : > { %s1061_s26 = smov [#allocation9]   ;;  %s1062_s28 = smov 128  }
 0x196   : > { %s539_s27 = sshll.u32 %s1061_s26, 4  ;;  %s1063_s29 = smov 8   ;;  %s540_s27 = int_to_ptr.vmem [resolvable:$true] %s539_s27 }
 0x197   : > { %793 = dma.vmem_to_hbm [thread:$0]  (%p810_p3), %s540_s27, 256, %s542_s25, [#allocation5], %s1062_s28, %s1062_s28, %s1063_s29  }
 0x198   : > { %1028 = dma.done.wait (%p810_p3), [#allocation5], 256  }
 0x199   : > { %1030 = vsyncadd (%p810_p3), [#allocation5], 4294967040 }
 0x19a PF: > { %s18_s17 = sadd.s32 1, %s1053_s17   ;;  %s1268_s12 = smov %s1037_s13 }
 0x19b   : > { %p15_p4 = scmp.ge.s32.totalorder %s18_s17, 4   ;;  %s1269_s13 = smov %s1041_s14 }
 0x19c   : > { %s1270_s14 = smov %s1131_s24  ;;  %s1271_s15 = smov %s1049_s16 }
 0x19d   : > { %s1272_s16 = smov %s1274_s18  ;;  %17 = sbr.rel (!%p15_p4) target bundleno = 6 (0x6), region = 95 }
 0x1a2   :  { %558 = vsyncpa [#allocation4], 1 }
 0x1a3   :  { %560 = vsyncpa [#allocation4 + $0x1], 1 }
 0x1a4   :  { %561 = vsyncpa [#allocation7], 1 }
 0x1a5   :  { %563 = vsyncpa [#allocation7 + $0x1], 1 }
 0x1a6   :  { %564 = vsyncpa [#allocation5], 1 }
 0x1a7   :  { %566 = vsyncpa [#allocation5 + $0x1], 1 }

</bundles_post_ra>
